<compile_context>
chip_gen: v7x
topology: tpu7x:2x2x1
jax: 0.10.0
libtpu: 0.0.40
codegen_flags: <defaults>
</compile_context>

<pallas_src>
import jax
import jax.numpy as jnp
import numpy as np
from jax.experimental import pallas as pl
from jax.experimental.pallas import tpu as pltpu

CE_W, DICE_W, FOCAL_W = 0.2, 0.4, 0.4
GAMMA = 2.0          # smp FocalLoss default
DICE_EPS = 1e-7      # smp DiceLoss default (smooth=0.0, log_loss=False)


def _mask_loss_stats_kernel(pred_ref, tgt_ref, out_ref):
    # pred_ref: (C, T) logits (any float dtype); classes on sublanes, pixels on lanes
    # tgt_ref:  (1, T) int32 class ids
    # out_ref:  (C, 8) f32 per-batch accumulator:
    #   col 0: per-class intersection   sum_p prob * onehot
    #   col 1: per-class prob sum       sum_p prob
    #   col 2: per-class NLL sum        sum_p (-log p) * onehot
    #   col 3: per-class true count     sum_p onehot
    #   col 4: per-class focal sum      sum_p focal
    j = pl.program_id(1)

    @pl.when(j == 0)
    def _():
        out_ref[...] = jnp.zeros_like(out_ref)

    x = pred_ref[...].astype(jnp.float32)               # (C, T)
    t = tgt_ref[...]                                    # (1, T) int32
    C, T = x.shape

    cls_ids = jax.lax.broadcasted_iota(jnp.int32, (C, T), 0)
    onehot = (cls_ids == t).astype(jnp.float32)          # (C, T)

    # ---- softmax / log-softmax over classes (sublane axis); reuse exp(z) ----
    m = jnp.max(x, axis=0, keepdims=True)                # (1, T)
    z = x - m
    e = jnp.exp(z)                                       # (C, T) -- only exp of the softmax path
    se = jnp.sum(e, axis=0, keepdims=True)               # (1, T)
    prob = e * (1.0 / se)                                # (C, T)
    logp = z - jnp.log(se)                               # (C, T)

    # ---- focal (binary focal-with-logits vs one-hot, gamma=2, alpha=None) ----
    # u = x for negatives, -x for positives; bce = softplus(u); pt = sigmoid(-u) == exp(-bce)
    u = x * (1.0 - 2.0 * onehot)
    a = jnp.exp(-jnp.abs(u))
    bce = jnp.maximum(u, 0.0) + jnp.log1p(a)
    pt = jnp.where(u > 0.0, a, 1.0) / (1.0 + a)
    focal = (1.0 - pt) * (1.0 - pt) * bce                # gamma = 2.0

    # ---- per-class partial sums over the pixel (lane) axis ----
    inter = jnp.sum(prob * onehot, axis=-1, keepdims=True)      # (C, 1)
    p_sum = jnp.sum(prob, axis=-1, keepdims=True)
    nll_sum = -jnp.sum(logp * onehot, axis=-1, keepdims=True)
    t_sum = jnp.sum(onehot, axis=-1, keepdims=True)
    f_sum = jnp.sum(focal, axis=-1, keepdims=True)

    out_ref[:, 0:1] += inter
    out_ref[:, 1:2] += p_sum
    out_ref[:, 2:3] += nll_sum
    out_ref[:, 3:4] += t_sum
    out_ref[:, 4:5] += f_sum


def _pick_tile(hw, num_classes, max_tile=8192):
    """Largest pixel tile (multiple of 128) dividing hw with a ~4 MiB f32 pred-block budget."""
    budget_elems = (4 * 1024 * 1024) // (4 * max(num_classes, 1))
    cap = max(128, min(max_tile, (budget_elems // 128) * 128))
    if hw % 128 != 0:
        return hw                      # ragged spatial size: single full-row block
    t = min(cap, hw)
    t -= t % 128
    while t >= 128:
        if hw % t == 0:
            return t
        t -= 128
    return hw


def mask_loss(pred_nchw, target_nhw, class_weights):
    """Combined loss = 0.2*CE(weighted) + 0.4*Dice(multiclass) + 0.4*Focal(multiclass)."""
    N, C, H, W = pred_nchw.shape
    HW = H * W
    P = N * HW
    tile = _pick_tile(HW, C)

    # Pure reshapes -- no host-side NCHW->NHWC transpose; logits keep their input dtype
    # (pass bf16 logits to halve HBM read traffic; math is f32 inside the kernel).
    pred3d = pred_nchw.reshape(N, C, HW)
    tgt3d = target_nhw.reshape(N, 1, HW).astype(jnp.int32)

    stats = pl.pallas_call(
        _mask_loss_stats_kernel,
        out_shape=jax.ShapeDtypeStruct((N, C, 8), jnp.float32),
        grid_spec=pltpu.PrefetchScalarGridSpec(
            num_scalar_prefetch=0,
            grid=(N, HW // tile),
            in_specs=[
                pl.BlockSpec((None, C, tile), lambda n, j: (n, 0, j)),
                pl.BlockSpec((None, 1, tile), lambda n, j: (n, 0, j)),
            ],
            out_specs=pl.BlockSpec((None, C, 8), lambda n, j: (n, 0, 0)),
        ),
        compiler_params=pltpu.CompilerParams(
            dimension_semantics=("parallel", "arbitrary")),
    )(pred3d, tgt3d)

    s = jnp.sum(stats, axis=0)                           # (C, 8): sum per-batch partials
    inter, p_sum, nll_sum, t_sum, f_sum = s[:, 0], s[:, 1], s[:, 2], s[:, 3], s[:, 4]
    w = class_weights.astype(jnp.float32)

    # CrossEntropyLoss(weight=w): sum(w[t]*nll)/sum(w[t]) = sum_c w_c*nll_c / sum_c w_c*count_c
    ce = jnp.sum(w * nll_sum) / jnp.sum(w * t_sum)
    # smp DiceLoss(mode='multiclass'): dims=(0,2), smooth=0, eps=1e-7, mask empty classes
    cardinality = p_sum + t_sum
    dice_score = 2.0 * inter / jnp.maximum(cardinality, DICE_EPS)
    dice = jnp.mean((1.0 - dice_score) * (t_sum > 0).astype(jnp.float32))
    # smp FocalLoss(mode='multiclass'): sum over classes of per-class mean binary focal loss
    focal = jnp.sum(f_sum) / P

    # TODO(synk): no ignore_index handling (torch CE default -100); ragged H*W falls back to
    # smaller/full-row tiles instead of masked tail blocks.
    return CE_W * ce + DICE_W * dice + FOCAL_W * focal


def mask_loss_ref(pred_nchw, target_nhw, class_weights):
    """Pure-JAX reference mirroring the PyTorch/smp semantics."""
    N, C, H, W = pred_nchw.shape
    x = jnp.transpose(pred_nchw, (0, 2, 3, 1)).reshape(-1, C).astype(jnp.float32)
    t = target_nhw.reshape(-1)
    logp = jax.nn.log_softmax(x, axis=-1)
    prob = jnp.exp(logp)
    onehot = jax.nn.one_hot(t, C, dtype=jnp.float32)

    nll = -jnp.take_along_axis(logp, t[:, None], axis=-1)[:, 0]
    w_t = class_weights[t]
    ce = jnp.sum(w_t * nll) / jnp.sum(w_t)

    inter = jnp.sum(prob * onehot, axis=0)
    card = jnp.sum(prob + onehot, axis=0)
    dice_score = 2.0 * inter / jnp.maximum(card, DICE_EPS)
    dice = jnp.mean((1.0 - dice_score) * (jnp.sum(onehot, axis=0) > 0))

    bce = jnp.maximum(x, 0.0) - x * onehot + jnp.log1p(jnp.exp(-jnp.abs(x)))
    pt = jnp.exp(-bce)
    focal = jnp.sum(jnp.mean((1.0 - pt) ** GAMMA * bce, axis=0))

    return CE_W * ce + DICE_W * dice + FOCAL_W * focal


if __name__ == "__main__":
    key = jax.random.PRNGKey(0)
    k1, k2 = jax.random.split(key)
    N, C, H, W = 2, 4, 16, 16

    pred = jax.random.normal(k1, (N, C, H, W), dtype=jnp.float32)
    target = jax.random.randint(k2, (N, H, W), 0, C, dtype=jnp.int32)
    # Deterministic "ce_class_weights" parameter (shape (C,)), as in the module __init__.
    ce_class_weights = jnp.array([1.0, 2.0, 0.5, 1.5], dtype=jnp.float32)

    loss = mask_loss(pred, target, ce_class_weights)
    loss = jax.block_until_ready(loss)

    ref = mask_loss_ref(pred, target, ce_class_weights)
    np.testing.assert_allclose(np.asarray(loss), np.asarray(ref), rtol=1e-4, atol=1e-5)

    print("KERNEL_OK")
</pallas_src>

<mosaic_0001>
module attributes {stable_mosaic.version = 11 : i64} {
  func.func @_mask_loss_stats_kernel(%arg0: i32, %arg1: i32, %arg2: memref<1x4x256xf32, #tpu.memory_space<vmem>>, %arg3: memref<1x1x256xi32, #tpu.memory_space<vmem>>, %arg4: memref<1x4x8xf32, #tpu.memory_space<vmem>>) attributes {dimension_semantics = [#tpu.dimension_semantics<parallel>, #tpu.dimension_semantics<arbitrary>], iteration_bounds = array<i64: 2, 1>, scalar_prefetch = 0 : i64, scratch_operands = 0 : i64, tpu.core_type = #tpu.core_type<tc>, window_params = [{transform_indices = @transform_0, window_bounds = array<i64: 1, 4, 256>}, {transform_indices = @transform_1, window_bounds = array<i64: 1, 1, 256>}, {transform_indices = @transform_2, window_bounds = array<i64: 1, 4, 8>}]} {
    %c0_i32 = arith.constant 0 : i32
    %0 = arith.cmpi eq, %arg1, %c0_i32 : i32
    %1 = arith.extui %0 : i1 to i32
    %c0_i32_0 = arith.constant 0 : i32
    %2 = arith.cmpi ne, %1, %c0_i32_0 : i32
    scf.if %2 {
      %cst_49 = arith.constant 0.000000e+00 : f32
      %96 = vector.broadcast %cst_49 : f32 to vector<4x8xf32>
      %c0_50 = arith.constant 0 : index
      %c0_51 = arith.constant 0 : index
      %c0_52 = arith.constant 0 : index
      %97 = vector.load %arg4[%c0_50, %c0_51, %c0_52] : memref<1x4x8xf32, #tpu.memory_space<vmem>>, vector<1x4x8xf32>
      %98 = vector.shape_cast %97 : vector<1x4x8xf32> to vector<4x8xf32>
      %99 = vector.shape_cast %96 : vector<4x8xf32> to vector<1x4x8xf32>
      tpu.vector_store %arg4[%c0_50, %c0_51, %c0_52], %99 {strides = array<i32>} : memref<1x4x8xf32, #tpu.memory_space<vmem>>, vector<1x4x8xf32>,
    } else {
    }
    %c0 = arith.constant 0 : index
    %c0_1 = arith.constant 0 : index
    %c0_2 = arith.constant 0 : index
    %3 = vector.load %arg2[%c0, %c0_1, %c0_2] : memref<1x4x256xf32, #tpu.memory_space<vmem>>, vector<1x4x256xf32>
    %4 = vector.shape_cast %3 : vector<1x4x256xf32> to vector<4x256xf32>
    %c0_3 = arith.constant 0 : index
    %c0_4 = arith.constant 0 : index
    %c0_5 = arith.constant 0 : index
    %5 = vector.load %arg3[%c0_3, %c0_4, %c0_5] : memref<1x1x256xi32, #tpu.memory_space<vmem>>, vector<1x1x256xi32>
    %6 = vector.shape_cast %5 : vector<1x1x256xi32> to vector<1x256xi32>
    %7 = tpu.iota {dimensions = array<i32: 0>} : vector<4x256xi32>
    %8 = vector.broadcast %6 : vector<1x256xi32> to vector<4x256xi32>
    %9 = arith.cmpi eq, %7, %8 : vector<4x256xi32>
    %10 = arith.extui %9 : vector<4x256xi1> to vector<4x256xi32>
    %11 = arith.sitofp %10 : vector<4x256xi32> to vector<4x256xf32>
    %cst = arith.constant dense<0xFF800000> : vector<256xf32>
    %12 = vector.multi_reduction <maximumf>, %4, %cst [0] : vector<4x256xf32> to vector<256xf32>
    %13 = vector.shape_cast %12 : vector<256xf32> to vector<1x256xf32>
    %14 = vector.broadcast %13 : vector<1x256xf32> to vector<4x256xf32>
    %15 = arith.subf %4, %14 : vector<4x256xf32>
    %16 = math.exp %15 : vector<4x256xf32>
    %cst_6 = arith.constant dense<0.000000e+00> : vector<256xf32>
    %17 = vector.multi_reduction <add>, %16, %cst_6 [0] : vector<4x256xf32> to vector<256xf32>
    %18 = vector.shape_cast %17 : vector<256xf32> to vector<1x256xf32>
    %cst_7 = arith.constant 1.000000e+00 : f32
    %19 = vector.broadcast %cst_7 : f32 to vector<1x256xf32>
    %20 = arith.divf %19, %18 : vector<1x256xf32>
    %21 = vector.broadcast %20 : vector<1x256xf32> to vector<4x256xf32>
    %22 = arith.mulf %16, %21 : vector<4x256xf32>
    %23 = math.log %18 : vector<1x256xf32>
    %24 = vector.broadcast %23 : vector<1x256xf32> to vector<4x256xf32>
    %25 = arith.subf %15, %24 : vector<4x256xf32>
    %cst_8 = arith.constant 2.000000e+00 : f32
    %26 = vector.broadcast %cst_8 : f32 to vector<4x256xf32>
    %27 = arith.mulf %26, %11 : vector<4x256xf32>
    %cst_9 = arith.constant 1.000000e+00 : f32
    %28 = vector.broadcast %cst_9 : f32 to vector<4x256xf32>
    %29 = arith.subf %28, %27 : vector<4x256xf32>
    %30 = arith.mulf %4, %29 : vector<4x256xf32>
    %31 = math.absf %30 : vector<4x256xf32>
    %cst_10 = arith.constant 0.000000e+00 : f32
    %32 = vector.broadcast %cst_10 : f32 to vector<4x256xf32>
    %33 = arith.subf %32, %31 : vector<4x256xf32>
    %34 = math.exp %33 : vector<4x256xf32>
    %cst_11 = arith.constant 0.000000e+00 : f32
    %35 = vector.broadcast %cst_11 : f32 to vector<4x256xf32>
    %36 = arith.maximumf %30, %35 : vector<4x256xf32>
    %37 = math.log1p %34 : vector<4x256xf32>
    %38 = arith.addf %36, %37 : vector<4x256xf32>
    %cst_12 = arith.constant 0.000000e+00 : f32
    %39 = vector.broadcast %cst_12 : f32 to vector<4x256xf32>
    %40 = arith.cmpf ogt, %30, %39 : vector<4x256xf32>
    %cst_13 = arith.constant 1.000000e+00 : f32
    %41 = vector.broadcast %cst_13 : f32 to vector<4x256xf32>
    %42 = arith.select %40, %34, %41 : vector<4x256xi1>, vector<4x256xf32>
    %cst_14 = arith.constant 1.000000e+00 : f32
    %43 = vector.broadcast %cst_14 : f32 to vector<4x256xf32>
    %44 = arith.addf %43, %34 : vector<4x256xf32>
    %45 = arith.divf %42, %44 : vector<4x256xf32>
    %cst_15 = arith.constant 1.000000e+00 : f32
    %46 = vector.broadcast %cst_15 : f32 to vector<4x256xf32>
    %47 = arith.subf %46, %45 : vector<4x256xf32>
    %cst_16 = arith.constant 1.000000e+00 : f32
    %48 = vector.broadcast %cst_16 : f32 to vector<4x256xf32>
    %49 = arith.subf %48, %45 : vector<4x256xf32>
    %50 = arith.mulf %47, %49 : vector<4x256xf32>
    %51 = arith.mulf %50, %38 : vector<4x256xf32>
    %52 = arith.mulf %22, %11 : vector<4x256xf32>
    %cst_17 = arith.constant dense<0.000000e+00> : vector<4xf32>
    %53 = vector.multi_reduction <add>, %52, %cst_17 [1] : vector<4x256xf32> to vector<4xf32>
    %54 = vector.shape_cast %53 : vector<4xf32> to vector<4x1xf32>
    %cst_18 = arith.constant dense<0.000000e+00> : vector<4xf32>
    %55 = vector.multi_reduction <add>, %22, %cst_18 [1] : vector<4x256xf32> to vector<4xf32>
    %56 = vector.shape_cast %55 : vector<4xf32> to vector<4x1xf32>
    %57 = arith.mulf %25, %11 : vector<4x256xf32>
    %cst_19 = arith.constant dense<0.000000e+00> : vector<4xf32>
    %58 = vector.multi_reduction <add>, %57, %cst_19 [1] : vector<4x256xf32> to vector<4xf32>
    %59 = vector.shape_cast %58 : vector<4xf32> to vector<4x1xf32>
    %cst_20 = arith.constant 0.000000e+00 : f32
    %60 = vector.broadcast %cst_20 : f32 to vector<4x1xf32>
    %61 = arith.subf %60, %59 : vector<4x1xf32>
    %cst_21 = arith.constant dense<0.000000e+00> : vector<4xf32>
    %62 = vector.multi_reduction <add>, %11, %cst_21 [1] : vector<4x256xf32> to vector<4xf32>
    %63 = vector.shape_cast %62 : vector<4xf32> to vector<4x1xf32>
    %cst_22 = arith.constant dense<0.000000e+00> : vector<4xf32>
    %64 = vector.multi_reduction <add>, %51, %cst_22 [1] : vector<4x256xf32> to vector<4xf32>
    %65 = vector.shape_cast %64 : vector<4xf32> to vector<4x1xf32>
    %c0_23 = arith.constant 0 : index
    %c0_24 = arith.constant 0 : index
    %c0_25 = arith.constant 0 : index
    %66 = vector.load %arg4[%c0_23, %c0_24, %c0_25] : memref<1x4x8xf32, #tpu.memory_space<vmem>>, vector<1x4x1xf32>
    %67 = vector.shape_cast %66 : vector<1x4x1xf32> to vector<4x1xf32>
    %68 = arith.addf %67, %54 : vector<4x1xf32>
    %c0_26 = arith.constant 0 : index
    %c0_27 = arith.constant 0 : index
    %c0_28 = arith.constant 0 : index
    %69 = vector.load %arg4[%c0_26, %c0_27, %c0_28] : memref<1x4x8xf32, #tpu.memory_space<vmem>>, vector<1x4x1xf32>
    %70 = vector.shape_cast %69 : vector<1x4x1xf32> to vector<4x1xf32>
    %71 = vector.shape_cast %68 : vector<4x1xf32> to vector<1x4x1xf32>
    tpu.vector_store %arg4[%c0_26, %c0_27, %c0_28], %71 {strides = array<i32>} : memref<1x4x8xf32, #tpu.memory_space<vmem>>, vector<1x4x1xf32>,
    %c0_29 = arith.constant 0 : index
    %c0_30 = arith.constant 0 : index
    %c1 = arith.constant 1 : index
    %72 = vector.load %arg4[%c0_29, %c0_30, %c1] : memref<1x4x8xf32, #tpu.memory_space<vmem>>, vector<1x4x1xf32>
    %73 = vector.shape_cast %72 : vector<1x4x1xf32> to vector<4x1xf32>
    %74 = arith.addf %73, %56 : vector<4x1xf32>
    %c0_31 = arith.constant 0 : index
    %c0_32 = arith.constant 0 : index
    %c1_33 = arith.constant 1 : index
    %75 = vector.load %arg4[%c0_31, %c0_32, %c1_33] : memref<1x4x8xf32, #tpu.memory_space<vmem>>, vector<1x4x1xf32>
    %76 = vector.shape_cast %75 : vector<1x4x1xf32> to vector<4x1xf32>
    %77 = vector.shape_cast %74 : vector<4x1xf32> to vector<1x4x1xf32>
    tpu.vector_store %arg4[%c0_31, %c0_32, %c1_33], %77 {strides = array<i32>} : memref<1x4x8xf32, #tpu.memory_space<vmem>>, vector<1x4x1xf32>,
    %c0_34 = arith.constant 0 : index
    %c0_35 = arith.constant 0 : index
    %c2 = arith.constant 2 : index
    %78 = vector.load %arg4[%c0_34, %c0_35, %c2] : memref<1x4x8xf32, #tpu.memory_space<vmem>>, vector<1x4x1xf32>
    %79 = vector.shape_cast %78 : vector<1x4x1xf32> to vector<4x1xf32>
    %80 = arith.addf %79, %61 : vector<4x1xf32>
    %c0_36 = arith.constant 0 : index
    %c0_37 = arith.constant 0 : index
    %c2_38 = arith.constant 2 : index
    %81 = vector.load %arg4[%c0_36, %c0_37, %c2_38] : memref<1x4x8xf32, #tpu.memory_space<vmem>>, vector<1x4x1xf32>
    %82 = vector.shape_cast %81 : vector<1x4x1xf32> to vector<4x1xf32>
    %83 = vector.shape_cast %80 : vector<4x1xf32> to vector<1x4x1xf32>
    tpu.vector_store %arg4[%c0_36, %c0_37, %c2_38], %83 {strides = array<i32>} : memref<1x4x8xf32, #tpu.memory_space<vmem>>, vector<1x4x1xf32>,
    %c0_39 = arith.constant 0 : index
    %c0_40 = arith.constant 0 : index
    %c3 = arith.constant 3 : index
    %84 = vector.load %arg4[%c0_39, %c0_40, %c3] : memref<1x4x8xf32, #tpu.memory_space<vmem>>, vector<1x4x1xf32>
    %85 = vector.shape_cast %84 : vector<1x4x1xf32> to vector<4x1xf32>
    %86 = arith.addf %85, %63 : vector<4x1xf32>
    %c0_41 = arith.constant 0 : index
    %c0_42 = arith.constant 0 : index
    %c3_43 = arith.constant 3 : index
    %87 = vector.load %arg4[%c0_41, %c0_42, %c3_43] : memref<1x4x8xf32, #tpu.memory_space<vmem>>, vector<1x4x1xf32>
    %88 = vector.shape_cast %87 : vector<1x4x1xf32> to vector<4x1xf32>
    %89 = vector.shape_cast %86 : vector<4x1xf32> to vector<1x4x1xf32>
    tpu.vector_store %arg4[%c0_41, %c0_42, %c3_43], %89 {strides = array<i32>} : memref<1x4x8xf32, #tpu.memory_space<vmem>>, vector<1x4x1xf32>,
    %c0_44 = arith.constant 0 : index
    %c0_45 = arith.constant 0 : index
    %c4 = arith.constant 4 : index
    %90 = vector.load %arg4[%c0_44, %c0_45, %c4] : memref<1x4x8xf32, #tpu.memory_space<vmem>>, vector<1x4x1xf32>
    %91 = vector.shape_cast %90 : vector<1x4x1xf32> to vector<4x1xf32>
    %92 = arith.addf %91, %65 : vector<4x1xf32>
    %c0_46 = arith.constant 0 : index
    %c0_47 = arith.constant 0 : index
    %c4_48 = arith.constant 4 : index
    %93 = vector.load %arg4[%c0_46, %c0_47, %c4_48] : memref<1x4x8xf32, #tpu.memory_space<vmem>>, vector<1x4x1xf32>
    %94 = vector.shape_cast %93 : vector<1x4x1xf32> to vector<4x1xf32>
    %95 = vector.shape_cast %92 : vector<4x1xf32> to vector<1x4x1xf32>
    tpu.vector_store %arg4[%c0_46, %c0_47, %c4_48], %95 {strides = array<i32>} : memref<1x4x8xf32, #tpu.memory_space<vmem>>, vector<1x4x1xf32>,
    return
  }
  func.func @transform_0(%arg0: i32, %arg1: i32) -> (i32, i32, i32) {
    %c0_i32 = arith.constant 0 : i32
    %c0_i32_0 = arith.constant 0 : i32
    return %arg0, %c0_i32, %arg1 : i32, i32, i32
  }
  func.func @transform_1(%arg0: i32, %arg1: i32) -> (i32, i32, i32) {
    %c0_i32 = arith.constant 0 : i32
    %c0_i32_0 = arith.constant 0 : i32
    return %arg0, %c0_i32, %arg1 : i32, i32, i32
  }
  func.func @transform_2(%arg0: i32, %arg1: i32) -> (i32, i32, i32) {
    %c0_i32 = arith.constant 0 : i32
    %c0_i32_0 = arith.constant 0 : i32
    %c0_i32_1 = arith.constant 0 : i32
    return %arg0, %c0_i32, %c0_i32_0 : i32, i32, i32
  }
}

</mosaic_0001>

<bundles_post_ra>
// kernel: tpu_custom_call.1
= control target key start
LH: loop header
LB: loop body
LE: loop exit
PB: predicated region body
PF: predicated region fallthrough
CT: control target
= control target key end

     0   :  { %7 = vsyncpa [#allocation3], 0  ;;  %s1049_s0 = inlined_call_operand.hbm [shape: f32[2,4,256], index: 0, kind: input, shape index: {}]   ;;  %s1050_s1 = inlined_call_operand.hbm [shape: s32[2,1,256], index: 1, kind: input, shape index: {}]   ;;  %s1051_s2 = inlined_call_operand.hbm [shape: f32[2,4,8], index: 2, kind: output, shape index: {}]  }
   0x1   :  { %9 = vsyncpa [#allocation3 + $0x1], 0 }
   0x2   :  { %10 = vsyncpa [#allocation6], 0 }
   0x3   :  { %12 = vsyncpa [#allocation6 + $0x1], 0 }
   0x4   :  { %13 = vsyncpa [#allocation4], 0 }
   0x5   :  { %15 = vsyncpa [#allocation4 + $0x1], 0  ;;  %s795_s9 = smov 0   ;;  %s797_s10 = smov 0  }
   0x6   :  { %s799_s11 = smov 0   ;;  %s801_s12 = smov 0  }
   0x7   :  { %s803_s13 = smov 0   ;;  %s805_s14 = smov 0  }
   0x8 LB: > { %s521_s15 = sadd.s32 4294967295, %s774_s14   ;;  %s522_s16 = sadd.s32 4294967294, %s774_s14   ;;  %s774_s14 = sphi %s805_s14, %s21_s14   ;;  %s770_s13 = sphi %s803_s13, %s1071_s13   ;;  %s766_s12 = sphi %s801_s12, %s1070_s12   ;;  %s762_s11 = sphi %s799_s11, %s1069_s11   ;;  %s758_s10 = sphi %s797_s10, %s1068_s10   ;;  %s754_s9 = sphi %s795_s9, %s1067_s9  }
   0x9   : > { %s33_s17 = sadd.s32 1, %s770_s13  ;;  %s42_s18 = sadd.s32 1, %s762_s11 }
   0xa   : > { %p35_p0 = scmp.ge.s32.totalorder %s33_s17, 2  ;;  %p49_p1 = scmp.ne.s32.totalorder %s762_s11, %s758_s10 }
   0xb   : > { %p50_p2 = scmp.eq.s32.totalorder %s774_s14, 0  ;;  %p55_p3 = scmp.ne.s32.totalorder %s758_s10, %s754_s9 }
   0xc   : > { %s1073_s17 = smov (%p35_p0, %s33_s17), 0  ;;  %p56_p5 = scmp.eq.s32.totalorder %s521_s15, 0 }
   0xd   : > { %p836_p4 = por %p50_p2, %p49_p1  ;;  %s37_s20 = ssub.s32 %s770_s13, %s1073_s17 }
   0xe   : > { %p107_p6 = scmp.eq.s32.totalorder %s521_s15, 1  ;;  %p40_p7 = scmp.eq.s32.totalorder %s37_s20, 0 }
   0xf   : > { %p842_p8 = por %p56_p5, %p55_p3  ;;  %p113_p10 = scmp.eq.s32.totalorder %s522_s16, 1 }
  0x10   : > { %p846_p9 = por %p107_p6, %p49_p1  ;;  %p560_p13 = scmp.lt.s32.totalorder %s774_s14, 2 }
  0x11   : > { %s1055_s21 = scalar_select %p842_p8, 1, 0 }
  0x12   : > { %s1056_s22 = scalar_select %p846_p9, 1, 0 }
  0x13   : > { %s851_s23 = scalar_select %p40_p7, %s762_s11, %s42_s18  }
  0x14   : > { %p853_p11 = por %p113_p10, %p55_p3  ;;  %s860_s25 = sand.u32 1, %s762_s11  }
  0x15   : > { %s525_s26 = sshll.u32 %s860_s25, 3  ;;  %s541_s27 = sshll.u32 %s770_s13, 7 }
  0x16   : > { %s1057_s24 = scalar_select %p853_p11, 1, 0 }
  0x17   : > { %s867_s30 = scalar_lea.hbm %s1049_s0, %s541_s27  ;;  %s137_s3 = scalar_lea.vmem [#allocation2], %s525_s26 }
  0x18   : > { %s147_s4 = sshll.u32 %s137_s3, 4  ;;  %p873_p0 = pnand %p560_p13, %p836_p4  ;;  %s869_s4 = int_to_ptr.vmem [resolvable:$true] %s147_s4 }
  0x19   : > { %s134_s6 = scalar_lea.sflag [#allocation3], %s860_s25  ;;  %s628_s7 = scalar_lea.hbm %s867_s30, 128 }
  0x1a   : > { %p629_p3 = scmp.ne.s32.totalorder %s867_s30, %s628_s7  ;;  %p630_p5 = pneg %p873_p0 }
  0x1b   : > { %s633_s16 = scalar_lea.hbm %s1049_s0, 256  ;;  %p634_p4 = scmp.lt.u32.totalorder %s867_s30, %s1049_s0 }
  0x1c   : > { %p631_p6 = pnand %p630_p5, %p629_p3  ;;  %p635_p10 = scmp.lt.u32.totalorder %s633_s16, %s628_s7 }
  0x1d   : > { %p637_p12 = scmp.lt.u32.totalorder %s628_s7, %s867_s30 }
  0x1e   : > { %p632_p7 = pneg %p631_p6  ;;  %p636_p13 = por %p635_p10, %p634_p4 }
  0x20   : > { %p638_p1 = por %p637_p12, %p636_p13 }
  0x22   : > { %p639_p2 = pnand %p638_p1, %p632_p7 }
  0x24   : > { %642 = shalt.err (!%p639_p2)
}
  0x25   : > { %s643_s20 = scalar_lea.vmem %s869_s4, 128  ;;  %s776_s26 = smov [#allocation2]  }
  0x26   : > { %p644_p3 = scmp.ne.s32.totalorder %s869_s4, %s643_s20  ;;  %s648_s27 = sshll.u32 %s776_s26, 4  ;;  %s649_s27 = int_to_ptr.vmem [resolvable:$false] %s648_s27 }
  0x27   : > { %s650_s28 = scalar_lea.vmem %s649_s27, 256  ;;  %p651_p9 = scmp.lt.s32.totalorder %s869_s4, %s649_s27 }
  0x28   : > { %p646_p6 = pnand %p644_p3, %p630_p5  ;;  %p652_p4 = scmp.lt.s32.totalorder %s650_s28, %s643_s20 }
  0x2a   : > { %p647_p11 = pneg %p646_p6  ;;  %p653_p10 = por %p652_p4, %p651_p9 }
  0x2c   : > { %p654_p12 = pnand %p653_p10, %p647_p11 }
  0x2e   : > { %657 = shalt.err (!%p654_p12)
}
  0x2f   : > { %552 = dma.hbm_to_vmem [thread:$0]  (!%p873_p0), %s867_s30, 128, %s869_s4, %s134_s6  }
  0x30   : > { %p1059_p1 = scmp.lt.s32.totalorder %s774_s14, 3  ;;  %p1060_p2 = scmp.ge.s32.totalorder %s774_s14, 1 }
  0x31   : > { %s528_s3 = sshll.u32 %s860_s25, 1  ;;  %s542_s7 = sshll.u32 %s770_s13, 5 }
  0x32   : > { %p909_p7 = pnand %p1060_p2, %p1059_p1  ;;  %s918_s16 = scalar_lea.hbm %s1050_s1, %s542_s7 }
  0x33   : > { %s158_s18 = scalar_lea.vmem [#allocation5], %s528_s3  ;;  %s155_s30 = scalar_lea.sflag [#allocation6], %s860_s25 }
  0x34   : > { %s1061_s29 = scalar_select %p909_p7, 1, 0 }
  0x35   : > { %s168_s19 = sshll.u32 %s158_s18, 4  ;;  %s658_s4 = scalar_lea.hbm %s918_s16, 32  ;;  %s169_s19 = int_to_ptr.vmem [resolvable:$true] %s168_s19 }
  0x36   : > { %p659_p9 = scmp.ne.s32.totalorder %s918_s16, %s658_s4  ;;  %s663_s26 = scalar_lea.hbm %s1050_s1, 64 }
  0x37   : > { %p664_p3 = scmp.lt.u32.totalorder %s918_s16, %s1050_s1  ;;  %p665_p6 = scmp.lt.u32.totalorder %s663_s26, %s658_s4 }
  0x38   : > { %p661_p11 = pnand %p659_p9, %p630_p5  ;;  %p667_p10 = scmp.lt.u32.totalorder %s658_s4, %s918_s16 }
  0x39   : > { %p666_p4 = por %p665_p6, %p664_p3 }
  0x3a   : > { %p662_p13 = pneg %p661_p11 }
  0x3b   : > { %p668_p12 = por %p667_p10, %p666_p4 }
  0x3d   : > { %p669_p1 = pnand %p668_p12, %p662_p13 }
  0x3f   : > { %672 = shalt.err (!%p669_p1)
}
  0x40   : > { %s673_s25 = scalar_lea.vmem %s169_s19, 32  ;;  %s777_s3 = smov [#allocation5]  }
  0x41   : > { %p674_p2 = scmp.ne.s32.totalorder %s169_s19, %s673_s25  ;;  %s678_s7 = sshll.u32 %s777_s3, 4  ;;  %s679_s7 = int_to_ptr.vmem [resolvable:$false] %s678_s7 }
  0x42   : > { %s680_s8 = scalar_lea.vmem %s679_s7, 64  ;;  %p681_p8 = scmp.lt.s32.totalorder %s169_s19, %s679_s7 }
  0x43   : > { %p676_p9 = pnand %p674_p2, %p630_p5  ;;  %p682_p7 = scmp.lt.s32.totalorder %s680_s8, %s673_s25 }
  0x45   : > { %p677_p11 = pneg %p676_p9  ;;  %p683_p3 = por %p682_p7, %p681_p8 }
  0x47   : > { %p684_p6 = pnand %p683_p3, %p677_p11 }
  0x49   : > { %687 = shalt.err (!%p684_p6)
}
  0x4a   : > { %555 = dma.hbm_to_vmem [thread:$0]  (!%p873_p0), %s918_s16, 32, %s169_s19, %s155_s30  }
  0x4b   : > { %p1062_p13 = scmp.ne.s32.totalorder %s1061_s29, 0 }
  0x4c   : > { %s943_s15 = sand.u32 (!%p1062_p13), 1, %s758_s10   ;;  %p1063_p5 = scmp.ne.s32.totalorder (!%p1062_p13), %s1055_s21, 0 }
  0x4d   : > { %177 = sbr.rel (%p1062_p13) target bundleno = 359 (0x167), region = 28  ;;  %s532_s18 = sshll.u32 (!%p1062_p13), %s943_s15, 3 }
  0x4e   : > { %s180_s4 = scalar_lea.sflag (!%p1062_p13), [#allocation3], %s943_s15  ;;  %s183_s6 = scalar_lea.vmem (!%p1062_p13), [#allocation2], %s532_s18 }
  0x54   : > { %741 = dma.done.wait (%p1063_p5), %s180_s4, 128  }
  0x55   : > { %743 = vsyncadd (%p1063_p5), %s180_s4, 4294967168  ;;  %s533_s5 = sshll.u32 %s943_s15, 1  ;;  %s189_s29 = scalar_lea.sflag [#allocation6], %s943_s15 }
  0x56   : > { %s192_s16 = scalar_lea.vmem [#allocation5], %s533_s5 }
  0x57   : > { %745 = dma.done.wait (%p1063_p5), %s189_s29, 32  }
  0x58   : > { %747 = vsyncadd (%p1063_p5), %s189_s29, 4294967264  ;;  %s534_s19 = sshll.u32 %s943_s15, 2  ;;  %vm224_vm0 = vcmask 60416   ;;  %v228_v0 = vlaneseq  ;;  %v778_v2 = vmov 0.0   ;;  %vm247_vm1 = vcmask 1043456   ;;  %v226_v5 = vld [vmem:[%s183_s6] sm:$0xff] }
  0x59   : > { %s958_s30 = scalar_lea.vmem [#allocation7], %s534_s19  ;;  %v227_v6 = vld [vmem:[%s192_s16] sm:$0x3]  ;;  %v245_v9 = vcombine.high %v226_v5, %v226_v5  ;;  %v248_v10 = vsel %vm247_vm1, %v226_v5, -inf  ;;  %vm382_vm6 = vcmask 3072   ;;  %vm386_vm7 = vcmask 11272  }
  0x5a   : > { %v229_v1 = vshrl.u32 %v228_v0, 7  ;;  %225 = vst.msk [vmem:[%s958_s30] sm:$0xf] %vm224_vm0, %v778_v2  ;;  %v249_v11 = vrot.slane %v248_v10, 4  ;;  %vm390_vm8 = vcmask 19472   ;;  %vm394_vm9 = vcmask 27672  }
  0x5b   : > { %v255_v12 = vsel %vm247_vm1, %v245_v9, -inf  ;;  %s538_s21 = sshll.u32 %s766_s12, 6  ;;  %s414_s20 = sshll.u32 %s958_s30, 4  ;;  %vm398_vm10 = vcmask 35872   ;;  %s1001_s20 = int_to_ptr.vmem [resolvable:$true] %s414_s20 }
  0x5c   : > { %v232_v3 = vsub.s32 0, %v229_v1  ;;  %v236_v4 = vsub.s32 1, %v229_v1  ;;  %v250_v15 = vmax.f32 %v248_v10, %v249_v11  ;;  %v256_v16 = vrot.slane %v255_v12, 4  ;;  %s999_s28 = scalar_lea.hbm %s1051_s2, %s538_s21  ;;  %s401_s25 = scalar_lea.sflag [#allocation4], %s943_s15 }
  0x5d   : > { %s688_s3 = scalar_lea.vmem %s1001_s20, 64  ;;  %p1064_p0 = scmp.ne.s32.totalorder %s1056_s22, 0 }
  0x5e   : > { %v233_v7 = vrot.slane %v227_v6, %v232_v3  ;;  %v237_v8 = vrot.slane %v227_v6, %v236_v4  ;;  %v251_v19 = vrot.slane %v250_v15, 2  ;;  %v257_v20 = vmax.f32 %v255_v12, %v256_v16  ;;  %p689_p8 = scmp.ne.s32.totalorder %s1001_s20, %s688_s3  ;;  %s779_s12 = smov [#allocation7]  }
  0x5f   : > { %s692_s7 = sshll.u32 %s779_s12, 4  ;;  %s693_s7 = int_to_ptr.vmem [resolvable:$false] %s692_s7 }
  0x60   : > { %vm238_vm2 = vcmp.eq.s32.totalorder %v229_v1, %v233_v7  ;;  %vm239_vm3 = vcmp.eq.s32.totalorder %v229_v1, %v237_v8  ;;  %v252_v23 = vmax.f32 %v250_v15, %v251_v19  ;;  %v258_v24 = vrot.slane %v257_v20, 2  ;;  %p690_p7 = pnand %p689_p8, %p1064_p0  ;;  %s694_s8 = scalar_lea.vmem %s693_s7, 128 }
  0x61   : > { %v963_v13 = vsel %vm238_vm2, 1.0, %v778_v2  ;;  %v965_v14 = vsel %vm239_vm3, 1.0, %v778_v2  ;;  %p695_p10 = scmp.lt.s32.totalorder %s1001_s20, %s693_s7  ;;  %p696_p12 = scmp.lt.s32.totalorder %s694_s8, %s688_s3 }
  0x62   : > { %v304_v17 = vmul.f32 2.0, %v963_v13  ;;  %v305_v18 = vmul.f32 2.0, %v965_v14  ;;  %v253_v26 = vrot.slane %v252_v23, 1  ;;  %v259_v27 = vmax.f32 %v257_v20, %v258_v24  ;;  %p691_p4 = pneg %p690_p7 }
  0x63   : > { %v338_v10 = vcombine.low %v963_v13, %v965_v14  ;;  %p697_p1 = por %p696_p12, %p695_p10 }
  0x64   : > { %v306_v21 = vsub.f32 1.0, %v304_v17  ;;  %v307_v22 = vsub.f32 1.0, %v305_v18  ;;  %v254_v29 = vmax.f32 %v252_v23, %v253_v26  ;;  %v260_v30 = vrot.slane %v259_v27, 1 }
  0x65   : > { %p698_p2 = pnand %p697_p1, %p691_p4 }
  0x66   : > { %v310_v25 = vcombine.low %v306_v21, %v307_v22  ;;  %v261_v32 = vmax.f32 %v259_v27, %v260_v30 }
  0x68   : > { %v312_v28 = vmul.f32 %v310_v25, %v226_v5  ;;  %v264_v34 = vcombine.low %v254_v29, %v261_v32 }
  0x6a   : > { %v313_v31 = vand.u32 2147483647, %v312_v28  ;;  %v266_v36 = vsub.f32 %v226_v5, %v264_v34  ;;  %vm328_vm4 = vcmp.gt.f32.partialorder %v312_v28, 0.0  ;;  %v317_v1 = vmax.f32 %v312_v28, 0.0 }
  0x6b   : > { %v367_v34 = vsel %vm247_vm1, %v963_v13, 0.0 }
  0x6c   : > { %v314_v33 = vsub.f32 0.0, %v313_v31  ;;  %v267_v37 = vmul.f32 1.442695, %v266_v36 }
  0x6e   : > { %v315_v35 = vmul.f32 1.442695, %v314_v33 }
  0x70   : > { %612 = vpow2.f32 %v315_v35  ;;  %v368_v35 = vsel %vm247_vm1, %v965_v14, 0.0 }
  0x71   : > { %614 = vpow2.f32 %v267_v37 }
  0x7a   : > { %v613_v38 = vpop.eup %612 }
  0x7b   : > { %v615_v39 = vpop.eup %614  ;;  %v318_v43 = vadd.f32 1.0, %v613_v38  ;;  %v321_v55 = vmul.f32 -0.5, %v613_v38  ;;  %v329_v59 = vsel %vm328_vm4, %v613_v38, 1.0  ;;  %v324_v61 = vand.u32 2147483647, %v613_v38 }
  0x7c   : > { %v270_v40 = vcombine.high %v615_v39, %v615_v39  ;;  %v272_v41 = vsel %vm247_vm1, %v615_v39, 0.0 }
  0x7d   : > { %v273_v42 = vrot.slane %v272_v41, 4  ;;  %616 = vrcp.f32 %v318_v43  ;;  %v322_v58 = vadd.f32 1.0, %v321_v55  ;;  %vm325_vm5 = vcmp.lt.f32.partialorder %v324_v61, 0.0004427343 }
  0x7e   : > { %v279_v44 = vsel %vm247_vm1, %v270_v40, 0.0  ;;  %618 = vlog2.f32 %v318_v43 }
  0x7f   : > { %v274_v45 = vadd.f32 %v273_v42, %v272_v41  ;;  %v280_v46 = vrot.slane %v279_v44, 4  ;;  %v323_v0 = vmul.f32 %v613_v38, %v322_v58  ;;  %v380_v41 = vld [vmem:[%s958_s30] sm:$0xf] }
  0x81   : > { %v275_v47 = vrot.slane %v274_v45, 2  ;;  %v281_v48 = vadd.f32 %v280_v46, %v279_v44 }
  0x83   : > { %v276_v49 = vadd.f32 %v275_v47, %v274_v45  ;;  %v282_v50 = vrot.slane %v281_v48, 2 }
  0x85   : > { %v277_v51 = vrot.slane %v276_v49, 1  ;;  %v283_v52 = vadd.f32 %v282_v50, %v281_v48 }
  0x87   : > { %v278_v53 = vadd.f32 %v277_v51, %v276_v49  ;;  %v284_v54 = vrot.slane %v283_v52, 1  ;;  %v617_v57 = vpop.eup %616 }
  0x88   : > { %v619_v60 = vpop.eup %618  ;;  %v332_v62 = vmul.f32 %v617_v57, %v329_v59 }
  0x89   : > { %v285_v56 = vadd.f32 %v284_v54, %v283_v52  ;;  %620 = vrcp.f32 %v278_v53  ;;  %v320_v63 = vmul.f32 0.6931472, %v619_v60 }
  0x8a   : > { %622 = vlog2.f32 %v278_v53  ;;  %v333_v2 = vsub.f32 1.0, %v332_v62 }
  0x8b   : > { %624 = vrcp.f32 %v285_v56  ;;  %v326_v4 = vsel %vm325_vm5, %v323_v0, %v320_v63 }
  0x8c   : > { %626 = vlog2.f32 %v285_v56  ;;  %v327_v11 = vadd.f32 %v326_v4, %v317_v1  ;;  %v334_v12 = vmul.f32 %v333_v2, %v333_v2 }
  0x8e   : > { %v335_v20 = vmul.f32 %v334_v12, %v327_v11 }
  0x90   : > { %v373_v28 = vcombine.high %v335_v20, %v335_v20  ;;  %v375_v37 = vsel %vm247_vm1, %v335_v20, 0.0 }
  0x92   : > { %v376_v38 = vsel %vm247_vm1, %v373_v28, 0.0 }
  0x93   : > { %v621_v3 = vpop.eup %620  ;;  %v377_v40 = vadd.f32 %v376_v38, %v375_v37 }
  0x94   : > { %v623_v5 = vpop.eup %622 }
  0x95   : > { %v625_v6 = vpop.eup %624  ;;  %v296_v7 = vmul.f32 0.6931472, %v623_v5 }
  0x96   : > { %v627_v8 = vpop.eup %626  ;;  %v292_v9 = vcombine.low %v621_v3, %v625_v6 }
  0x97   : > { %v298_v15 = vmul.f32 0.6931472, %v627_v8 }
  0x98   : > { %v294_v16 = vmul.f32 %v615_v39, %v292_v9  ;;  %v369_v39 = vadd.f32 %v368_v35, %v367_v34 }
  0x99   : > { %v301_v17 = vcombine.low %v296_v7, %v298_v15 }
  0x9a   : > { %v340_v18 = vmul.f32 %v338_v10, %v294_v16  ;;  %v350_v19 = vcombine.high %v294_v16, %v294_v16  ;;  %v352_v26 = vsel %vm247_vm1, %v294_v16, 0.0 }
  0x9b   : > { %v303_v21 = vsub.f32 %v266_v36, %v301_v17 }
  0x9c   : > { %v342_v22 = vcombine.high %v340_v18, %v340_v18  ;;  %v344_v23 = vsel %vm247_vm1, %v340_v18, 0.0  ;;  %v353_v27 = vsel %vm247_vm1, %v350_v19, 0.0 }
  0x9d   : > { %v357_v24 = vmul.f32 %v338_v10, %v303_v21  ;;  %v354_v32 = vadd.f32 %v353_v27, %v352_v26 }
  0x9e   : > { %v345_v25 = vsel %vm247_vm1, %v342_v22, 0.0 }
  0x9f   : > { %v346_v29 = vadd.f32 %v345_v25, %v344_v23  ;;  %v359_v30 = vcombine.high %v357_v24, %v357_v24  ;;  %v361_v31 = vsel %vm247_vm1, %v357_v24, 0.0 }
  0xa1   : > { %347 = vadd.xlane.f32.xlu0 %v346_v29  ;;  %v362_v33 = vsel %vm247_vm1, %v359_v30, 0.0 }
  0xa2   : > { %v363_v36 = vadd.f32 %v362_v33, %v361_v31 }
  0xa4   : > { %364 = vadd.xlane.f32.xlu1 %v363_v36 }
  0xa5   : > { %355 = vadd.xlane.f32.xlu0 %v354_v32 }
  0xa8   : > { %370 = vadd.xlane.f32.xlu1 %v369_v39 }
  0xa9   : > { %378 = vadd.xlane.f32.xlu0 %v377_v40 }
 0x12e   : > { %v348_v13 = vpop.xlane.xlu0 %347 }
 0x12f   : > { %v381_v14 = vadd.f32 %v380_v41, %v348_v13 }
 0x131   : > { %383 = vst.msk [vmem:[%s958_s30] sm:$0xf] %vm382_vm6, %v381_v14  ;;  %v365_v45 = vpop.xlane.xlu1 %364 }
 0x132   : > { %v356_v42 = vpop.xlane.xlu0 %355  ;;  %v366_v46 = vsub.f32 0.0, %v365_v45 }
 0x135   : > { %v371_v49 = vpop.xlane.xlu1 %370 }
 0x136   : > { %v379_v52 = vpop.xlane.xlu0 %378 }
 0x138   : > { %v384_v43 = vld [vmem:[%s958_s30] sm:$0xf] }
 0x139   : > { %v385_v44 = vadd.f32 %v384_v43, %v356_v42 }
 0x13b   : > { %387 = vst.msk [vmem:[%s958_s30] sm:$0xf] %vm386_vm7, %v385_v44 }
 0x142   : > { %v388_v47 = vld [vmem:[%s958_s30] sm:$0xf] }
 0x143   : > { %v389_v48 = vadd.f32 %v388_v47, %v366_v46 }
 0x145   : > { %391 = vst.msk [vmem:[%s958_s30] sm:$0xf] %vm390_vm8, %v389_v48 }
 0x14c   : > { %v392_v50 = vld [vmem:[%s958_s30] sm:$0xf] }
 0x14d   : > { %v393_v51 = vadd.f32 %v392_v50, %v371_v49 }
 0x14f   : > { %395 = vst.msk [vmem:[%s958_s30] sm:$0xf] %vm394_vm9, %v393_v51 }
 0x156   : > { %v396_v53 = vld [vmem:[%s958_s30] sm:$0xf] }
 0x157   : > { %v397_v54 = vadd.f32 %v396_v53, %v379_v52 }
 0x159   : > { %399 = vst.msk [vmem:[%s958_s30] sm:$0xf] %vm398_vm10, %v397_v54 }
 0x15a   : > { %701 = shalt.err (!%p698_p2)
}
 0x15b   : > { %s702_s15 = scalar_lea.hbm %s999_s28, 64  ;;  %s706_s6 = scalar_lea.hbm %s1051_s2, 128 }
 0x15c   : > { %p703_p9 = scmp.ne.s32.totalorder %s999_s28, %s702_s15  ;;  %p707_p6 = scmp.lt.u32.totalorder %s999_s28, %s1051_s2 }
 0x15d   : > { %p708_p13 = scmp.lt.u32.totalorder %s706_s6, %s702_s15  ;;  %p710_p8 = scmp.lt.u32.totalorder %s702_s15, %s999_s28 }
 0x15e   : > { %p704_p11 = pnand %p703_p9, %p1064_p0 }
 0x15f   : > { %p709_p5 = por %p708_p13, %p707_p6 }
 0x160   : > { %p705_p3 = pneg %p704_p11 }
 0x161   : > { %p711_p7 = por %p710_p8, %p709_p5 }
 0x163   : > { %p712_p4 = pnand %p711_p7, %p705_p3 }
 0x165   : > { %715 = shalt.err (!%p712_p4)
}
 0x166   : > { %547 = dma.vmem_to_hbm [thread:$0]  (%p1064_p0), %s1001_s20, 64, %s999_s28, %s401_s25  }
 0x167 PF: > { %s426_s16 = sand.u32 1, %s754_s9   ;;  %p1065_p10 = scmp.ne.s32.totalorder %s1057_s24, 0 }
 0x168   : > { %p1066_p12 = scmp.ge.s32.totalorder %s774_s14, 2  ;;  %s427_s19 = scalar_lea.sflag [#allocation4], %s426_s16 }
 0x16a   : > { %p557_p1 = pnand %p1066_p12, %p1065_p10 }
 0x16c   : > { %749 = dma.done.wait (!%p557_p1), %s427_s19, 64  }
 0x16d   : > { %751 = vsyncadd (!%p557_p1), %s427_s19, 4294967232  ;;  %s21_s14 = sadd.s32 1, %s774_s14   ;;  %s1067_s9 = smov %s758_s10 }
 0x16e   : > { %p18_p2 = scmp.ge.s32.totalorder %s21_s14, 4   ;;  %s1068_s10 = smov %s762_s11 }
 0x16f   : > { %s1069_s11 = smov %s851_s23  ;;  %s1070_s12 = smov %s770_s13 }
 0x170   : > { %s1071_s13 = smov %s1073_s17  ;;  %20 = sbr.rel (!%p18_p2) target bundleno = 8 (0x8), region = 90 }
 0x177   :  { %432 = vsyncpa [#allocation3], 1 }
 0x178   :  { %434 = vsyncpa [#allocation3 + $0x1], 1 }
 0x179   :  { %435 = vsyncpa [#allocation6], 1 }
 0x17a   :  { %437 = vsyncpa [#allocation6 + $0x1], 1 }
 0x17b   :  { %438 = vsyncpa [#allocation4], 1 }
 0x17c   :  { %440 = vsyncpa [#allocation4 + $0x1], 1 }

</bundles_post_ra>
